<compile_context>
chip_gen: v5e
topology: v5e:2x2
jax: 0.10.0
libtpu: 0.0.40
codegen_flags: <defaults>
</compile_context>

<pallas_src>
import functools

import jax
import jax.numpy as jnp
from jax.experimental import pallas as pl
from jax.experimental.pallas import tpu as pltpu

LANE = 128


def _norm_reduce_kernel(x_ref, o_ref, *, inv_c):
    # x_ref block: (Bb, C, T) lane-dense tile;  o_ref block: (Bb, 1, T).
    # Reduce |x| over channels, accumulating directly in float32 (no widened
    # (Bb, C, T) f32 temporary).  Static 1/C folded in; cast on store.
    s = jnp.sum(jnp.abs(x_ref[...]), axis=1, keepdims=True, dtype=jnp.float32)
    o_ref[...] = (s * inv_c).astype(o_ref.dtype)


def _cdiv(a, b):
    return -(-a // b)


def _round_down(v, m):
    return (v // m) * m


def norm_reducer(x, dim=1):
    """Pallas equivalent of NormReducer(dim=1) for NCHW inputs."""
    assert dim == 1, "kernel is specialized for channel-dim reduction (dim=1)"
    # TODO(synk): other `dim` values would need a wrapper-side transpose to a
    # lane-dense layout; the reference module is only exercised with dim=1.
    B, C, H, W = x.shape
    HW = H * W
    itemsize = jnp.dtype(x.dtype).itemsize

    # ---- Tile sizing (HBM-bandwidth-bound op) -----------------------------
    # ~8 MiB per input buffer -> ~16 MiB double-buffered + small output
    # buffers, well inside the 48 MiB scoped VMEM requested below on every
    # generation (v5e/v6e 128 MiB physical, v7x 64 MiB physical).
    budget_bytes = 8 * 1024 * 1024

    # Spatial tile T: full HW when it fits (exempt from the 128 rule),
    # otherwise the largest lane-aligned tile inside the byte budget.
    if HW <= LANE or C * HW * itemsize <= budget_bytes:
        T = HW
    else:
        T = max(LANE, _round_down(budget_bytes // (C * itemsize), LANE))
    # TODO(synk): if C is ever so large that a (1, C, 128) block exceeds the
    # budget, add an "arbitrary" grid axis over C-chunks with an f32
    # accumulator scratch (pl.when init/finalize).  Not needed here.

    # Batch blocking: pack several images per step when the spatial tile alone
    # is small (late conv layers), to keep blocks MiB-scale.
    per_image_bytes = max(1, C * T * itemsize)
    Bb = int(min(B, max(1, budget_bytes // per_image_bytes)))

    # v7x has 2 TensorCores: make sure the parallel grid has a few steps so
    # both cores get work instead of one giant single-step block.
    nb, nt = _cdiv(B, Bb), _cdiv(HW, T)
    if nb * nt < 4:
        if B > 1:
            target_nb = min(B, _cdiv(4, nt))
            Bb = max(1, _cdiv(B, target_nb))
            nb = _cdiv(B, Bb)
        if nb * nt < 4 and T == HW and HW > LANE:
            want_nt = min(_cdiv(4, nb), _cdiv(HW, LANE))
            T = max(LANE, _round_down(_cdiv(HW, want_nt), LANE))
            nt = _cdiv(HW, T)

    # Layout plumbing only: flatten spatial dims (lane-dense last axis).
    xf = x.reshape(B, C, HW)

    kernel = functools.partial(_norm_reduce_kernel, inv_c=1.0 / C)

    out = pl.pallas_call(
        kernel,
        out_shape=jax.ShapeDtypeStruct((B, 1, HW), x.dtype),
        grid_spec=pl.GridSpec(
            grid=(nb, nt),
            in_specs=[
                # (Bb, C, T): C is the full array dim; T is a multiple of 128
                # or the full HW.  Ragged tails are masked by Pallas.
                pl.BlockSpec((Bb, C, T), lambda b, t: (b, 0, t)),
            ],
            out_specs=pl.BlockSpec((Bb, 1, T), lambda b, t: (b, 0, t)),
        ),
        compiler_params=pltpu.CompilerParams(
            dimension_semantics=("parallel", "parallel"),
            vmem_limit_bytes=48 * 1024 * 1024,
        ),
        cost_estimate=pl.CostEstimate(
            flops=2 * B * C * HW,           # abs + add
            transcendentals=0,
            bytes_accessed=B * C * HW * itemsize + B * HW * itemsize,
        ),
    )(xf)

    return out.reshape(B, H, W)


if __name__ == "__main__":
    key = jax.random.PRNGKey(0)
    B, C, H, W = 2, 4, 16, 16
    x = jax.random.normal(key, (B, C, H, W), dtype=jnp.float32)

    y = norm_reducer(x, dim=1)
    jax.block_until_ready(y)

    # Reference: same semantics as torch x.abs().mean(1).
    y_ref = jnp.mean(jnp.abs(x), axis=1)
    assert y.shape == (B, H, W)
    assert jnp.allclose(y, y_ref, atol=1e-6, rtol=1e-6)

    print("KERNEL_OK")
</pallas_src>

<mosaic_0001>
module attributes {stable_mosaic.version = 11 : i64} {
  func.func @_norm_reduce_kernel(%arg0: i32, %arg1: i32, %arg2: memref<1x4x128xf32, #tpu.memory_space<vmem>>, %arg3: memref<1x1x128xf32, #tpu.memory_space<vmem>>) attributes {dimension_semantics = [#tpu.dimension_semantics<parallel>, #tpu.dimension_semantics<parallel>], iteration_bounds = array<i64: 2, 2>, scalar_prefetch = 0 : i64, scratch_operands = 0 : i64, tpu.core_type = #tpu.core_type<tc>, window_params = [{transform_indices = @transform_0, window_bounds = array<i64: 1, 4, 128>}, {transform_indices = @transform_1, window_bounds = array<i64: 1, 1, 128>}]} {
    %c0 = arith.constant 0 : index
    %c0_0 = arith.constant 0 : index
    %c0_1 = arith.constant 0 : index
    %0 = vector.load %arg2[%c0, %c0_0, %c0_1] : memref<1x4x128xf32, #tpu.memory_space<vmem>>, vector<1x4x128xf32>
    %1 = math.absf %0 : vector<1x4x128xf32>
    %cst = arith.constant dense<0.000000e+00> : vector<1x128xf32>
    %2 = vector.multi_reduction <add>, %1, %cst [1] : vector<1x4x128xf32> to vector<1x128xf32>
    %3 = vector.shape_cast %2 : vector<1x128xf32> to vector<1x1x128xf32>
    %cst_2 = arith.constant 2.500000e-01 : f32
    %4 = vector.broadcast %cst_2 : f32 to vector<1x1x128xf32>
    %5 = arith.mulf %3, %4 : vector<1x1x128xf32>
    %c0_3 = arith.constant 0 : index
    %c0_4 = arith.constant 0 : index
    %c0_5 = arith.constant 0 : index
    %6 = vector.load %arg3[%c0_3, %c0_4, %c0_5] : memref<1x1x128xf32, #tpu.memory_space<vmem>>, vector<1x1x128xf32>
    tpu.vector_store %arg3[%c0_3, %c0_4, %c0_5], %5 {strides = array<i32>} : memref<1x1x128xf32, #tpu.memory_space<vmem>>, vector<1x1x128xf32>,
    return
  }
  func.func @transform_0(%arg0: i32, %arg1: i32) -> (i32, i32, i32) {
    %c0_i32 = arith.constant 0 : i32
    %c0_i32_0 = arith.constant 0 : i32
    return %arg0, %c0_i32, %arg1 : i32, i32, i32
  }
  func.func @transform_1(%arg0: i32, %arg1: i32) -> (i32, i32, i32) {
    %c0_i32 = arith.constant 0 : i32
    %c0_i32_0 = arith.constant 0 : i32
    return %arg0, %c0_i32, %arg1 : i32, i32, i32
  }
}

</mosaic_0001>

<bundles_post_ra>
// kernel: tpu_custom_call.1
= control target key start
LH: loop header
LB: loop body
LE: loop exit
PB: predicated region body
PF: predicated region fallthrough
CT: control target
= control target key end

     0   :  { %6 = vsyncpa [#allocation3], 0  ;;  %s632_s0 = inlined_call_operand.hbm [shape: f32[2,4,256], index: 0, kind: input, shape index: {}]   ;;  %s633_s1 = inlined_call_operand.hbm [shape: f32[2,1,256], index: 1, kind: output, shape index: {}]  }
   0x1   :  { %8 = vsyncpa [#allocation3 + $0x1], 0 }
   0x2   :  { %9 = vsyncpa [#allocation4], 0 }
   0x3   :  { %11 = vsyncpa [#allocation4 + $0x1], 0  ;;  %s489_s6 = smov 0   ;;  %s491_s7 = smov 0  }
   0x4   :  { %s493_s8 = smov 0   ;;  %s495_s9 = smov 0  }
   0x5   :  { %s497_s10 = smov 0   ;;  %s499_s11 = smov 0  }
   0x6   :  { %s501_s12 = smov 0   ;;  %s503_s13 = smov 0  }
   0x7 LB: > { %s259_s14 = sadd.s32 4294967295, %s477_s13   ;;  %s260_s15 = sadd.s32 4294967294, %s477_s13   ;;  %s477_s13 = sphi %s503_s13, %s17_s13   ;;  %s473_s12 = sphi %s501_s12, %s644_s12   ;;  %s469_s11 = sphi %s499_s11, %s643_s11   ;;  %s465_s10 = sphi %s497_s10, %s642_s10   ;;  %s461_s9 = sphi %s495_s9, %s641_s9   ;;  %s457_s8 = sphi %s493_s8, %s640_s8   ;;  %s453_s7 = sphi %s491_s7, %s639_s7   ;;  %s449_s6 = sphi %s489_s6, %s638_s6  }
   0x8   : > { %s26_s16 = sadd.s32 1, %s469_s11  ;;  %s29_s17 = sadd.s32 1, %s473_s12 }
   0x9   : > { %p27_p0 = scmp.ge.s32.totalorder %s26_s16, 2  ;;  %s38_s18 = sadd.s32 1, %s457_s8 }
   0xa   : > { %p45_p1 = scmp.ne.s32.totalorder %s457_s8, %s453_s7  ;;  %p46_p2 = scmp.eq.s32.totalorder %s477_s13, 0 }
   0xb   : > { %s646_s16 = smov (%p27_p0, %s26_s16), 0  ;;  %s648_s17 = smov (!%p27_p0, %s29_s17), %s473_s12 }
   0xc   : > { %s34_s19 = ssub.s32 %s469_s11, %s646_s16  ;;  %p542_p3 = por %p46_p2, %p45_p1 }
   0xd   : > { %p31_p4 = scmp.ge.s32.totalorder %s648_s17, 2  ;;  %p51_p5 = scmp.ne.s32.totalorder %s453_s7, %s449_s6 }
   0xe   : > { %p52_p6 = scmp.eq.s32.totalorder %s259_s14, 0  ;;  %p77_p7 = scmp.eq.s32.totalorder %s259_s14, 3 }
   0xf   : > { %s650_s17 = smov (%p31_p4, %s648_s17), 0  ;;  %p83_p10 = scmp.eq.s32.totalorder %s260_s15, 3 }
  0x10   : > { %p550_p8 = por %p52_p6, %p51_p5  ;;  %p554_p9 = por %p77_p7, %p45_p1 }
  0x11   : > { %s33_s23 = ssub.s32 %s473_s12, %s650_s17  ;;  %p560_p12 = por %p83_p10, %p51_p5 }
  0x12   : > { %s35_s24 = sor.u32 %s34_s19, %s33_s23  ;;  %p283_p13 = scmp.lt.s32.totalorder %s477_s13, 4 }
  0x13   : > { %p36_p11 = scmp.eq.s32.totalorder %s35_s24, 0  ;;  %s103_s26 = sand.u32 1, %s457_s8  }
  0x14   : > { %s263_s28 = sshll.u32 %s103_s26, 2  ;;  %s264_s29 = sshll.u32 %s473_s12, 1 }
  0x15   : > { %s567_s27 = scalar_select %p36_p11, %s457_s8, %s38_s18  }
  0x16   : > { %s111_s30 = sadd.s32 %s469_s11, %s264_s29  ;;  %s107_s2 = scalar_lea.vmem [#allocation2], %s263_s28 }
  0x17   : > { %s117_s3 = sshll.u32 %s107_s2, 4  ;;  %s265_s4 = sshll.u32 %s111_s30, 2  ;;  %s118_s3 = int_to_ptr.vmem [resolvable:$true] %s117_s3 }
  0x18   : > { %s113_s15 = scalar_lea.hbm %s632_s0, %s265_s4  ;;  %p276_p0 = pnand %p283_p13, %p542_p3 }
  0x19   : > { %s115_s19 = sshll.u32 %s113_s15, 4  ;;  %p266_p1 = scmp.ge.s32.totalorder %s477_s13, 1  ;;  %s116_s19 = int_to_ptr.hbm [resolvable:$true] %s115_s19 }
  0x1a   : > { %s104_s23 = scalar_lea.sflag [#allocation3], %s103_s26  ;;  %p122_p2 = scmp.lt.s32.totalorder %s477_s13, 5 }
  0x1b   : > { %278 = dma.hbm_to_vmem [thread:$0]  (!%p276_p0), %s116_s19, 64, %s118_s3, %s104_s23  }
  0x1c   : > { %p123_p4 = pnand %p266_p1, %p122_p2 }
  0x1d   : > { %s579_s18 = sand.u32 (!%p123_p4), 1, %s453_s7  }
  0x1e   : > { %126 = sbr.rel (%p123_p4) target bundleno = 57 (0x39), region = 24  ;;  %s267_s24 = sshll.u32 (!%p123_p4), %s579_s18, 2 }
  0x1f   : > { %s129_s28 = scalar_lea.sflag (!%p123_p4), [#allocation3], %s579_s18  ;;  %s132_s29 = scalar_lea.vmem (!%p123_p4), [#allocation2], %s267_s24 }
  0x23   : > { %440 = dma.done.wait (%p550_p8), %s129_s28, 64  }
  0x24   : > { %442 = vsyncadd (%p550_p8), %s129_s28, 4294967232  ;;  %v151_v0 = vld [vmem:[%s132_s29] sm:$0xf]  ;;  %vm153_vm0 = vcmask 1043456   ;;  %s268_s20 = sshll.u32 %s465_s10, 1  ;;  %s150_s3 = scalar_lea.vmem [#allocation5], %s579_s18 }
  0x25   : > { %v152_v1 = vand.u32 2147483647, %v151_v0  ;;  %s173_s26 = sadd.s32 %s461_s9, %s268_s20  ;;  %s176_s4 = sshll.u32 %s150_s3, 4  ;;  %s177_s4 = int_to_ptr.vmem [resolvable:$true] %s176_s4 }
  0x26   : > { %s174_s21 = scalar_lea.hbm %s633_s1, %s173_s26  ;;  %s164_s14 = scalar_lea.sflag [#allocation4], %s579_s18 }
  0x27   : > { %v154_v2 = vsel %vm153_vm0, %v152_v1, 0.0  ;;  %s178_s5 = sshll.u32 %s174_s21, 4  ;;  %s399_s23 = scalar_lea.hbm %s633_s1, 4  ;;  %s179_s5 = int_to_ptr.hbm [resolvable:$true] %s178_s5 }
  0x28   : > { %v155_v3 = vrot.slane %v154_v2, 4  ;;  %s393_s10 = sshra.s32 %s179_s5, 4  ;;  %s394_s10 = int_to_ptr.hbm [resolvable:$true] %s393_s10 }
  0x29   : > { %s395_s9 = scalar_lea.hbm %s394_s10, 1  ;;  %p400_p7 = scmp.lt.s32.totalorder %s394_s10, %s633_s1 }
  0x2a   : > { %v156_v4 = vadd.f32 %v155_v3, %v154_v2  ;;  %p396_p3 = scmp.ne.s32.totalorder %s394_s10, %s395_s9  ;;  %p401_p8 = scmp.lt.s32.totalorder %s399_s23, %s395_s9 }
  0x2c   : > { %v157_v5 = vrot.slane %v156_v4, 2  ;;  %p397_p5 = pnand %p396_p3, %p554_p9  ;;  %p402_p10 = por %p401_p8, %p400_p7 }
  0x2e   : > { %v158_v6 = vadd.f32 %v157_v5, %v156_v4  ;;  %p398_p6 = pneg %p397_p5 }
  0x30   : > { %v159_v7 = vrot.slane %v158_v6, 1  ;;  %p403_p11 = pnand %p402_p10, %p398_p6 }
  0x32   : > { %v160_v8 = vadd.f32 %v159_v7, %v158_v6 }
  0x34   : > { %v161_v9 = vmul.f32 0.25, %v160_v8 }
  0x36   : > { %162 = vst [vmem:[%s150_s3] sm:$0x1] %v161_v9 }
  0x37   : > { %406 = shalt.err (!%p403_p11)
}
  0x38   : > { %273 = dma.vmem_to_hbm [thread:$0]  (%p554_p9), %s177_s4, 16, %s179_s5, %s164_s14  }
  0x39 PF: > { %p284_p13 = scmp.ge.s32.totalorder %s477_s13, 2  ;;  %s190_s18 = sand.u32 1, %s449_s6  }
  0x3a   : > { %s191_s29 = scalar_lea.sflag [#allocation4], %s190_s18 }
  0x3b   : > { %p280_p0 = pnand %p284_p13, %p560_p12 }
  0x3d   : > { %p281_p1 = pneg %p280_p0 }
  0x3f   : > { %444 = dma.done.wait (%p281_p1), %s191_s29, 16  }
  0x40   : > { %446 = vsyncadd (%p281_p1), %s191_s29, 4294967280  ;;  %s17_s13 = sadd.s32 1, %s477_s13   ;;  %s638_s6 = smov %s453_s7 }
  0x41   : > { %p14_p2 = scmp.ge.s32.totalorder %s17_s13, 6   ;;  %s639_s7 = smov %s457_s8 }
  0x42   : > { %s640_s8 = smov %s567_s27  ;;  %s641_s9 = smov %s469_s11 }
  0x43   : > { %s642_s10 = smov %s473_s12  ;;  %s643_s11 = smov %s646_s16 }
  0x44   : > { %s644_s12 = smov %s650_s17  ;;  %16 = sbr.rel (!%p14_p2) target bundleno = 7 (0x7), region = 69 }
  0x49   :  { %196 = vsyncpa [#allocation3], 1 }
  0x4a   :  { %198 = vsyncpa [#allocation3 + $0x1], 1 }
  0x4b   :  { %199 = vsyncpa [#allocation4], 1 }
  0x4c   :  { %201 = vsyncpa [#allocation4 + $0x1], 1 }

</bundles_post_ra>
